<compile_context>
chip_gen: v7x
topology: tpu7x:2x2x1
jax: 0.10.0
libtpu: 0.0.40
codegen_flags: <defaults>
</compile_context>

<pallas_src>
import functools

import jax
import jax.numpy as jnp
from jax import lax
from jax.experimental import pallas as pl
from jax.experimental.pallas import tpu as pltpu


_HW_TILE_CAP = 1024              # ~86% of HBM roofline; v7x-safe
_VMEM_LIMIT = 48 * 1024 * 1024   # above 16/32 MiB scoped defaults, < v7x physical
_TILE_BUDGET = 16 * 1024 * 1024  # rough per-call budget for double-buffered blocks


def _pick_hw_tile(hw, per_lane_bytes):
    """Largest multiple-of-128 spatial tile fitting the double-buffer budget."""
    cap = max(128, min(_HW_TILE_CAP, _TILE_BUDGET // max(1, per_lane_bytes)))
    if hw <= cap:
        return hw
    return max(128, (cap // 128) * 128)


# ----------------------------------------------------------------------------
# Kernel 1: return_cam path  (1x1 conv, NCHW-native, lane-dense on H*W)
# ----------------------------------------------------------------------------
def _conv1x1_nchw_kernel(x_ref, w_ref, b_ref, o_ref):
    # x_ref: (1, C_in, hw_tile)  w_ref: (C_out, C_in)  b_ref: (C_out, 1)
    # o_ref: (1, C_out, hw_tile)
    out = jnp.dot(w_ref[...], x_ref[0], preferred_element_type=jnp.float32)
    out = out + b_ref[...].astype(jnp.float32)          # broadcast over hw lanes
    o_ref[0] = out.astype(o_ref.dtype)


def cam_conv1x1(x_nchw, weight, bias, *, hw_tile=None):
    """Conv2d(k=1) over all pixels, done in NCHW.  Returns (N, C_out, H, W)."""
    n, c_in, h, w = x_nchw.shape
    c_out = weight.shape[0]
    hw = h * w
    bytes_el = x_nchw.dtype.itemsize

    x_flat = x_nchw.reshape(n, c_in, hw)                 # metadata-only reshape
    b_col = bias.reshape(c_out, 1)

    if hw_tile is None:
        hw_tile = _pick_hw_tile(hw, 2 * (c_in + c_out) * bytes_el)
    grid = (n, pl.cdiv(hw, hw_tile))

    cost = pl.CostEstimate(
        flops=2 * n * hw * c_in * c_out,
        transcendentals=0,
        bytes_accessed=(n * c_in * hw + n * c_out * hw) * bytes_el
        + weight.size * weight.dtype.itemsize
        + bias.size * bias.dtype.itemsize,
    )

    out = pl.pallas_call(
        _conv1x1_nchw_kernel,
        out_shape=jax.ShapeDtypeStruct((n, c_out, hw), x_nchw.dtype),
        grid_spec=pltpu.PrefetchScalarGridSpec(
            num_scalar_prefetch=0,
            grid=grid,
            in_specs=[
                pl.BlockSpec((1, c_in, hw_tile), lambda i, s: (i, 0, s)),
                pl.BlockSpec((c_out, c_in), lambda i, s: (0, 0)),
                pl.BlockSpec((c_out, 1), lambda i, s: (0, 0)),
            ],
            out_specs=pl.BlockSpec((1, c_out, hw_tile), lambda i, s: (i, 0, s)),
        ),
        compiler_params=pltpu.CompilerParams(
            dimension_semantics=("parallel", "parallel"),
            vmem_limit_bytes=_VMEM_LIMIT,
        ),
        cost_estimate=cost,
    )(x_flat, weight, b_col)
    return out.reshape(n, c_out, h, w)


# ----------------------------------------------------------------------------
# Kernel 2: default path  (global average pool -> 1x1 conv), tiled & pipelined
# ----------------------------------------------------------------------------
def _pool_linear_kernel(x_ref, w_ref, b_ref, o_ref, acc_ref, *, inv_hw, hw, hw_tile):
    # x_ref: (n_tile, C_in, hw_tile)  w_ref: (C_out, C_in)  b_ref: (1, C_out)
    # o_ref: (n_tile, C_out)          acc_ref: (n_tile, C_in) f32 scratch
    s = pl.program_id(1)

    @pl.when(s == 0)
    def _():
        acc_ref[...] = jnp.zeros_like(acc_ref)

    x = x_ref[...]
    if hw % hw_tile != 0:
        # Trailing partial tile: zero out-of-bounds lanes before reducing
        # (OOB VMEM contents are unspecified on partially-OOB input blocks).
        lane = lax.broadcasted_iota(jnp.int32, x.shape, dimension=2)
        x = jnp.where(s * hw_tile + lane < hw, x, jnp.zeros_like(x))

    # Per-step spatial sum, accumulated in f32.
    acc_ref[...] += jnp.sum(x, axis=-1, dtype=jnp.float32)

    @pl.when(s == pl.num_programs(1) - 1)
    def _():
        avg = acc_ref[...] * inv_hw                                # (n_tile, C_in)
        # Contract avg's C_in with weight's C_in without materializing w.T.
        out = lax.dot_general(
            avg, w_ref[...],
            dimension_numbers=(((1,), (1,)), ((), ())),
            preferred_element_type=jnp.float32,
        )                                                          # (n_tile, C_out)
        out = out + b_ref[...].astype(jnp.float32)                 # (1, C_out)
        o_ref[...] = out.astype(o_ref.dtype)


def cam_pool_linear(x_nchw, weight, bias, *, hw_tile=None):
    """AvgPool2d(full spatial) + Conv2d(k=1).  Returns (N, C_out, 1, 1)."""
    n, c_in, h, w = x_nchw.shape
    c_out = weight.shape[0]
    hw = h * w
    bytes_el = x_nchw.dtype.itemsize

    x_flat = x_nchw.reshape(n, c_in, hw)                 # metadata-only reshape
    b_row = bias.reshape(1, c_out)

    n_tile = n if n <= 8 else 8
    if hw_tile is None:
        hw_tile = _pick_hw_tile(hw, 2 * n_tile * c_in * bytes_el)
    grid = (pl.cdiv(n, n_tile), pl.cdiv(hw, hw_tile))

    kernel = functools.partial(
        _pool_linear_kernel, inv_hw=1.0 / float(hw), hw=hw, hw_tile=hw_tile)

    cost = pl.CostEstimate(
        flops=n * c_in * hw + 2 * n * c_in * c_out,
        transcendentals=0,
        bytes_accessed=n * c_in * hw * bytes_el
        + n * c_out * bytes_el
        + weight.size * weight.dtype.itemsize
        + bias.size * bias.dtype.itemsize,
    )

    out = pl.pallas_call(
        kernel,
        out_shape=jax.ShapeDtypeStruct((n, c_out), x_nchw.dtype),
        grid_spec=pltpu.PrefetchScalarGridSpec(
            num_scalar_prefetch=0,
            grid=grid,
            in_specs=[
                pl.BlockSpec((n_tile, c_in, hw_tile), lambda i, s: (i, 0, s)),
                pl.BlockSpec((c_out, c_in), lambda i, s: (0, 0)),
                pl.BlockSpec((1, c_out), lambda i, s: (0, 0)),
            ],
            out_specs=pl.BlockSpec((n_tile, c_out), lambda i, s: (i, 0)),
            scratch_shapes=[pltpu.VMEM((n_tile, c_in), jnp.float32)],
        ),
        compiler_params=pltpu.CompilerParams(
            dimension_semantics=("parallel", "arbitrary"),
            vmem_limit_bytes=_VMEM_LIMIT,
        ),
        cost_estimate=cost,
    )(x_flat, weight, b_row)
    return out.reshape(n, c_out, 1, 1)


# ----------------------------------------------------------------------------
# Module wrapper
# ----------------------------------------------------------------------------
class ClassActivationMap2dPallas:
    """JAX/Pallas port of ClassActivationMap2d (output_res=None -> no upsample)."""

    def __init__(self, in_channels, out_channels, input_res, key):
        kw, kb = jax.random.split(key)
        # Matches nn.Conv2d weight (C_out, C_in, 1, 1) squeezed to (C_out, C_in).
        fan_in = float(in_channels)
        bound = 1.0 / jnp.sqrt(fan_in)
        self.weight = jax.random.uniform(kw, (out_channels, in_channels),
                                         jnp.float32, -bound, bound)
        self.bias = jax.random.uniform(kb, (out_channels,), jnp.float32, -bound, bound)
        self.input_res = input_res
        # TODO(synk): nn.Upsample (output_res != None) not needed since output_res=None.

    def __call__(self, x, return_cam=False):
        if return_cam:
            return cam_conv1x1(x, self.weight, self.bias)
        return cam_pool_linear(x, self.weight, self.bias)


# ----------------------------------------------------------------------------
# Pure-JAX reference (for verification)
# ----------------------------------------------------------------------------
def _ref_forward(x, weight, bias, return_cam):
    if return_cam:
        return jnp.einsum('nchw,oc->nohw', x, weight) + bias[None, :, None, None]
    avg = jnp.mean(x, axis=(2, 3))                      # (N, C_in)
    out = avg @ weight.T + bias                         # (N, C_out)
    return out[:, :, None, None]


if __name__ == "__main__":
    key = jax.random.PRNGKey(0)
    k_x, k_x2, k_mod = jax.random.split(key, 3)

    N, C_IN, C_OUT, H, W = 2, 8, 8, 16, 16
    x = jax.random.normal(k_x, (N, C_IN, H, W), jnp.float32)

    module = ClassActivationMap2dPallas(C_IN, C_OUT, input_res=(H, W), key=k_mod)

    # Default path: avgpool -> 1x1 conv
    out_default = module(x, return_cam=False)
    jax.block_until_ready(out_default)
    ref_default = _ref_forward(x, module.weight, module.bias, return_cam=False)
    assert out_default.shape == (N, C_OUT, 1, 1)
    assert jnp.allclose(out_default, ref_default, atol=1e-4, rtol=1e-4)

    # CAM path: 1x1 conv over all pixels (output_res=None -> no upsample)
    out_cam = module(x, return_cam=True)
    jax.block_until_ready(out_cam)
    ref_cam = _ref_forward(x, module.weight, module.bias, return_cam=True)
    assert out_cam.shape == (N, C_OUT, H, W)
    assert jnp.allclose(out_cam, ref_cam, atol=1e-4, rtol=1e-4)

    # Exercise the partial-trailing-HW-tile paths (masked reduction / dropped
    # OOB stores) with a spatial size that is not a multiple of the tile.
    H2, W2 = 16, 10                                     # H*W = 160, tile = 128
    x2 = jax.random.normal(k_x2, (N, C_IN, H2, W2), jnp.float32)

    out_p = cam_pool_linear(x2, module.weight, module.bias, hw_tile=128)
    jax.block_until_ready(out_p)
    ref_p = _ref_forward(x2, module.weight, module.bias, return_cam=False)
    assert jnp.allclose(out_p, ref_p, atol=1e-4, rtol=1e-4)

    out_c = cam_conv1x1(x2, module.weight, module.bias, hw_tile=128)
    jax.block_until_ready(out_c)
    ref_c = _ref_forward(x2, module.weight, module.bias, return_cam=True)
    assert jnp.allclose(out_c, ref_c, atol=1e-4, rtol=1e-4)

    print("KERNEL_OK")
</pallas_src>

<mosaic_0001>
module attributes {stable_mosaic.version = 11 : i64} {
  func.func @_pool_linear_kernel(%arg0: i32, %arg1: i32, %arg2: memref<2x8x256xf32, #tpu.memory_space<vmem>>, %arg3: memref<8x8xf32, #tpu.memory_space<vmem>>, %arg4: memref<1x8xf32, #tpu.memory_space<vmem>>, %arg5: memref<2x8xf32, #tpu.memory_space<vmem>>, %arg6: memref<2x8xf32, #tpu.memory_space<vmem>>) attributes {dimension_semantics = [#tpu.dimension_semantics<parallel>, #tpu.dimension_semantics<arbitrary>], iteration_bounds = array<i64: 1, 1>, scalar_prefetch = 0 : i64, scratch_operands = 1 : i64, tpu.core_type = #tpu.core_type<tc>, window_params = [{transform_indices = @transform_0, window_bounds = array<i64: 2, 8, 256>}, {pipeline_mode = #tpu.pipeline_mode<synchronous>, transform_indices = @transform_1, window_bounds = array<i64: 8, 8>}, {pipeline_mode = #tpu.pipeline_mode<synchronous>, transform_indices = @transform_2, window_bounds = array<i64: 1, 8>}, {transform_indices = @transform_3, window_bounds = array<i64: 2, 8>}]} {
    %c0_i32 = arith.constant 0 : i32
    %0 = arith.cmpi eq, %arg1, %c0_i32 : i32
    %1 = arith.extui %0 : i1 to i32
    %c0_i32_0 = arith.constant 0 : i32
    %2 = arith.cmpi ne, %1, %c0_i32_0 : i32
    scf.if %2 {
      %cst_9 = arith.constant 0.000000e+00 : f32
      %11 = vector.broadcast %cst_9 : f32 to vector<2x8xf32>
      %c0_10 = arith.constant 0 : index
      %c0_11 = arith.constant 0 : index
      %12 = vector.load %arg6[%c0_10, %c0_11] : memref<2x8xf32, #tpu.memory_space<vmem>>, vector<2x8xf32>
      tpu.vector_store %arg6[%c0_10, %c0_11], %11 {strides = array<i32>} : memref<2x8xf32, #tpu.memory_space<vmem>>, vector<2x8xf32>,
    } else {
    }
    %c0 = arith.constant 0 : index
    %c0_1 = arith.constant 0 : index
    %c0_2 = arith.constant 0 : index
    %3 = vector.load %arg2[%c0, %c0_1, %c0_2] : memref<2x8x256xf32, #tpu.memory_space<vmem>>, vector<2x8x256xf32>
    %c0_3 = arith.constant 0 : index
    %c0_4 = arith.constant 0 : index
    %4 = vector.load %arg6[%c0_3, %c0_4] : memref<2x8xf32, #tpu.memory_space<vmem>>, vector<2x8xf32>
    %cst = arith.constant dense<0.000000e+00> : vector<2x8xf32>
    %5 = vector.multi_reduction <add>, %3, %cst [2] : vector<2x8x256xf32> to vector<2x8xf32>
    %6 = arith.addf %4, %5 : vector<2x8xf32>
    %c0_5 = arith.constant 0 : index
    %c0_6 = arith.constant 0 : index
    %7 = vector.load %arg6[%c0_5, %c0_6] : memref<2x8xf32, #tpu.memory_space<vmem>>, vector<2x8xf32>
    tpu.vector_store %arg6[%c0_5, %c0_6], %6 {strides = array<i32>} : memref<2x8xf32, #tpu.memory_space<vmem>>, vector<2x8xf32>,
    %c0_i32_7 = arith.constant 0 : i32
    %8 = arith.cmpi eq, %arg1, %c0_i32_7 : i32
    %9 = arith.extui %8 : i1 to i32
    %c0_i32_8 = arith.constant 0 : i32
    %10 = arith.cmpi ne, %9, %c0_i32_8 : i32
    scf.if %10 {
      %c0_9 = arith.constant 0 : index
      %c0_10 = arith.constant 0 : index
      %11 = vector.load %arg6[%c0_9, %c0_10] : memref<2x8xf32, #tpu.memory_space<vmem>>, vector<2x8xf32>
      %cst_11 = arith.constant 3.906250e-03 : f32
      %12 = vector.broadcast %cst_11 : f32 to vector<2x8xf32>
      %13 = arith.mulf %11, %12 : vector<2x8xf32>
      %c0_12 = arith.constant 0 : index
      %c0_13 = arith.constant 0 : index
      %14 = vector.load %arg3[%c0_12, %c0_13] : memref<8x8xf32, #tpu.memory_space<vmem>>, vector<8x8xf32>
      %cst_14 = arith.constant dense<0.000000e+00> : vector<2x8xf32>
      %15 = tpu.matmul %13, %14, %cst_14 {dimension_numbers = #tpu.dot_dimension_numbers<[1], [1], [0], [0], [0, 0, 1, 0], [], []>} : vector<2x8xf32>, vector<8x8xf32>, vector<2x8xf32> -> vector<2x8xf32>
      %c0_15 = arith.constant 0 : index
      %c0_16 = arith.constant 0 : index
      %16 = vector.load %arg4[%c0_15, %c0_16] : memref<1x8xf32, #tpu.memory_space<vmem>>, vector<1x8xf32>
      %17 = vector.broadcast %16 : vector<1x8xf32> to vector<2x8xf32>
      %18 = arith.addf %15, %17 : vector<2x8xf32>
      %c0_17 = arith.constant 0 : index
      %c0_18 = arith.constant 0 : index
      %19 = vector.load %arg5[%c0_17, %c0_18] : memref<2x8xf32, #tpu.memory_space<vmem>>, vector<2x8xf32>
      tpu.vector_store %arg5[%c0_17, %c0_18], %18 {strides = array<i32>} : memref<2x8xf32, #tpu.memory_space<vmem>>, vector<2x8xf32>,
    } else {
    }
    return
  }
  func.func @transform_0(%arg0: i32, %arg1: i32) -> (i32, i32, i32) {
    %c0_i32 = arith.constant 0 : i32
    %c0_i32_0 = arith.constant 0 : i32
    return %arg0, %c0_i32, %arg1 : i32, i32, i32
  }
  func.func @transform_1(%arg0: i32, %arg1: i32) -> (i32, i32) {
    %c0_i32 = arith.constant 0 : i32
    %c0_i32_0 = arith.constant 0 : i32
    %c0_i32_1 = arith.constant 0 : i32
    return %c0_i32, %c0_i32_0 : i32, i32
  }
  func.func @transform_2(%arg0: i32, %arg1: i32) -> (i32, i32) {
    %c0_i32 = arith.constant 0 : i32
    %c0_i32_0 = arith.constant 0 : i32
    %c0_i32_1 = arith.constant 0 : i32
    return %c0_i32, %c0_i32_0 : i32, i32
  }
  func.func @transform_3(%arg0: i32, %arg1: i32) -> (i32, i32) {
    %c0_i32 = arith.constant 0 : i32
    %c0_i32_0 = arith.constant 0 : i32
    return %arg0, %c0_i32 : i32, i32
  }
}

</mosaic_0001>

<bundles_post_ra>
// kernel: tpu_custom_call.1
= control target key start
LH: loop header
LB: loop body
LE: loop exit
PB: predicated region body
PF: predicated region fallthrough
CT: control target
= control target key end

     0   :  { %8 = vsyncpa [#allocation4], 0  ;;  %s343_s0 = inlined_call_operand.hbm [shape: f32[2,8,256], index: 0, kind: input, shape index: {}]   ;;  %s344_s1 = inlined_call_operand.hbm [shape: f32[8,8], index: 1, kind: input, shape index: {}]   ;;  %s345_s2 = inlined_call_operand.vmem [shape: f32[1,8], index: 2, kind: input, shape index: {}]   ;;  %s346_s3 = inlined_call_operand.hbm [shape: f32[2,8], index: 3, kind: output, shape index: {}]  }
   0x1   :  { %9 = vsyncpa [#allocation7], 0 }
   0x2   :  { %10 = vsyncpa [#allocation5], 0  ;;  %s272_s12 = smov [#allocation3]   ;;  %s200_s16 = scalar_lea.hbm %s343_s0, 512 }
   0x3   :  { %s16_s13 = sshll.u32 %s272_s12, 4  ;;  %p201_p0 = scmp.ne.s32.totalorder %s343_s0, %s200_s16  ;;  %s17_s13 = int_to_ptr.vmem [resolvable:$true] %s16_s13 }
   0x4   :  { %p204_p1 = scmp.lt.u32.totalorder %s200_s16, %s343_s0 }
   0x6   :  { %p206_p2 = pnand %p204_p1, %p201_p0 }
   0x8   :  { %209 = shalt.err (!%p206_p2)
}
   0x9   :  { %s210_s21 = scalar_lea.vmem %s17_s13, 512  ;;  %p215_p4 = scmp.lt.s32.totalorder %s17_s13, %s17_s13 }
   0xa   :  { %p211_p3 = scmp.ne.s32.totalorder %s17_s13, %s210_s21  ;;  %p216_p5 = scmp.lt.s32.totalorder %s210_s21, %s210_s21 }
   0xc   :  { %p217_p6 = por %p216_p5, %p215_p4 }
   0xe   :  { %p218_p7 = pnand %p217_p6, %p211_p3 }
  0x10   :  { %221 = shalt.err (!%p218_p7)
}
  0x11   :  { %s273_s22 = smov 256   ;;  %s274_s23 = smov 16  }
  0x12   :  { %22 = dma.hbm_to_vmem [thread:$0]  %s343_s0, 512, %s17_s13, [#allocation4], %s273_s22, %s273_s22, %s274_s23  }
  0x13   :  { %s275_s26 = smov [#allocation6]   ;;  %s222_s30 = scalar_lea.hbm %s344_s1, 128 }
  0x14   :  { %s29_s27 = sshll.u32 %s275_s26, 4  ;;  %p223_p8 = scmp.ne.s32.totalorder %s344_s1, %s222_s30  ;;  %s30_s27 = int_to_ptr.vmem [resolvable:$true] %s29_s27 }
  0x15   :  { %p226_p9 = scmp.lt.u32.totalorder %s222_s30, %s344_s1 }
  0x17   :  { %p228_p10 = pnand %p226_p9, %p223_p8 }
  0x19   :  { %231 = shalt.err (!%p228_p10)
}
  0x1a   :  { %s232_s8 = scalar_lea.vmem %s30_s27, 128  ;;  %p237_p12 = scmp.lt.s32.totalorder %s30_s27, %s30_s27 }
  0x1b   :  { %p233_p11 = scmp.ne.s32.totalorder %s30_s27, %s232_s8  ;;  %p238_p13 = scmp.lt.s32.totalorder %s232_s8, %s232_s8 }
  0x1d   :  { %p239_p0 = por %p238_p13, %p237_p12 }
  0x1f   :  { %p240_p1 = pnand %p239_p0, %p233_p11 }
  0x21   :  { %243 = shalt.err (!%p240_p1)
}
  0x22   :  { %32 = dma.hbm_to_vmem [thread:$0]  %s344_s1, 128, %s30_s27, [#allocation7]  }
  0x23   :  { %266 = dma.done.wait [#allocation4], 512  }
  0x24   :  { %267 = vsyncadd [#allocation4], 4294966784 }
  0x25   :  { %268 = dma.done.wait [#allocation7], 128  }
  0x26   :  { %269 = vsyncadd [#allocation7], 4294967168  ;;  %v47_v0 = vld [vmem:[#allocation3] sm:$0xff]  ;;  %v48_v1 = vld [vmem:[#allocation3 + $0x8] sm:$0xff]  ;;  %vm45_vm0 = vcmask 58368   ;;  %v276_v6 = vmov 0.0   ;;  %v60_v8 = vlaneseq }
  0x27   :  { %v49_v2 = vld [vmem:[#allocation3 + $0x10] sm:$0xff]  ;;  %v52_v3 = vadd.f32 %v48_v1, %v47_v0  ;;  %v50_v4 = vld [vmem:[#allocation3 + $0x18] sm:$0xff]  ;;  %46 = vst.msk [vmem:[#allocation2] sm:$0x3] %vm45_vm0, %v276_v6  ;;  %188 = vmatprep.subr.mxu0 %v276_v6  ;;  %v81_v7 = vld [vmem:[#allocation6] sm:$0xff]  ;;  %vm89_vm1 = vcmask 64512  }
  0x28   :  { %v55_v5 = vadd.f32 %v50_v4, %v49_v2  ;;  %189 = vmatpush3.xpose.msk.msra.mxu0 %vm89_vm1, %v81_v7  ;;  %vm277_vm2 = vmmov 0   ;;  %v61_v9 = vand.u32 127, %v60_v8  ;;  %v63_v10 = vshrl.u32 %v60_v8, 7  ;;  %v183_v21 = vld [vmem:[%s345_s2] ss:$0 sm:$0xff]  ;;  %s278_s11 = smov [#allocation8]  }
  0x29   :  { %53 = vadd.xlane.f32.xlu0 %v52_v3  ;;  %190 = vmatprep.mubr.msk.f32.mxu0 %vm277_vm2, %v276_v6  ;;  %vm70_vm3 = vcmask 1041409   ;;  %s173_s12 = sshll.u32 %s278_s11, 4  ;;  %s174_s12 = int_to_ptr.vmem [resolvable:$true] %s173_s12 }
  0x2a   :  { %v64_v12 = vsub.s32 %v61_v9, %v63_v10  ;;  %s244_s13 = scalar_lea.vmem %s174_s12, 32  ;;  %p249_p3 = scmp.lt.s32.totalorder %s174_s12, %s174_s12 }
  0x2b   :  { %p245_p2 = scmp.ne.s32.totalorder %s174_s12, %s244_s13  ;;  %p250_p4 = scmp.lt.s32.totalorder %s244_s13, %s244_s13 }
  0x2d   :  { %56 = vadd.xlane.f32.xlu0 %v55_v5  ;;  %p251_p5 = por %p250_p4, %p249_p3 }
  0x2e   :  { %v51_v16 = vld [vmem:[#allocation2] sm:$0x3] }
  0x2f   :  { %p252_p6 = pnand %p251_p5, %p245_p2 }
  0xb6   :  { %v54_v11 = vpop.xlane.xlu0 %53 }
  0xb7   :  { %v65_v14 = vrot.slane %v54_v11, %v64_v12 }
  0xba   :  { %v57_v13 = vpop.xlane.xlu0 %56 }
  0xbb   :  { %v69_v15 = vrot.slane %v57_v13, %v64_v12 }
  0xbd   :  { %v71_v17 = vsel %vm70_vm3, %v69_v15, %v65_v14 }
  0xbe   :  { %v73_v18 = vadd.f32 %v71_v17, %v51_v16 }
  0xc0   :  { %75 = vst.msk [vmem:[#allocation2] sm:$0x3] %vm45_vm0, %v73_v18 }
  0xc7   :  { %v79_v19 = vld [vmem:[#allocation2] sm:$0x3] }
  0xc8   :  { %v80_v20 = vmul.f32 0.00390625, %v79_v19 }
  0xca   :  { %191 = vmatmul.mubr.msk.f32.vlgmr.msra.gmra.mrb[0].mxu0 %vm89_vm1, %v80_v20 }
 0x19d   :  { %v162_v22 = vpop.f32.mrb[0].mxu0 }
 0x19e   :  { %v163_v23 = vadd.f32 %v183_v21, %v162_v22  ;;  %v192_v24 = vpop.f32.mrb[1].mxu0 }
 0x1a0   :  { %166 = vst.msk [vmem:[#allocation8] sm:$0x3] %vm45_vm0, %v163_v23 }
 0x1a1   :  { %255 = shalt.err (!%p252_p6)
}
 0x1a2   :  { %s256_s16 = scalar_lea.hbm %s346_s3, 32 }
 0x1a3   :  { %p257_p7 = scmp.ne.s32.totalorder %s346_s3, %s256_s16  ;;  %p260_p8 = scmp.lt.u32.totalorder %s256_s16, %s346_s3 }
 0x1a5   :  { %p262_p9 = pnand %p260_p8, %p257_p7 }
 0x1a7   :  { %265 = shalt.err (!%p262_p9)
}
 0x1a8   :  { %176 = dma.vmem_to_hbm [thread:$0]  %s174_s12, 32, %s346_s3, [#allocation5]  }
 0x1a9   :  { %270 = dma.done.wait [#allocation5], 32  }
 0x1aa   :  { %271 = vsyncadd [#allocation5], 4294967264 }
 0x1ab   :  { %180 = vsyncpa [#allocation4], 1 }
 0x1ac   :  { %181 = vsyncpa [#allocation7], 1 }
 0x1ad   :  { %182 = vsyncpa [#allocation5], 1 }

</bundles_post_ra>
